<compile_context>
chip_gen: v6e
topology: v6e:2x2x1
jax: 0.10.0
libtpu: 0.0.40
codegen_flags: <defaults>
</compile_context>

<pallas_src>
import jax
import jax.numpy as jnp
from jax.experimental import pallas as pl
from jax.experimental.pallas import tpu as pltpu

LANE = 128
SUBLANE = 8


def _round_up(x, m):
    return ((x + m - 1) // m) * m


def _cdiv(a, b):
    return -(-a // b)


def _pad2d(a, rows, cols):
    r, c = a.shape
    return jnp.pad(a, ((0, rows - r), (0, cols - c)))


def qnet_kernel(x_ref, w1_ref, b1_ref, w2_ref, b2_ref, w3_ref, b3_ref, o_ref):
    # fc1 + relu (f32 MXU accumulate, f32 epilogue)
    h = jnp.dot(x_ref[...], w1_ref[...], preferred_element_type=jnp.float32)
    h = jnp.maximum(h + b1_ref[...], 0.0)
    # fc2 + relu
    h = jnp.dot(h, w2_ref[...], preferred_element_type=jnp.float32)
    h = jnp.maximum(h + b2_ref[...], 0.0)
    # fc3 (no activation) -- output is only A lanes wide (un-padded)
    out = jnp.dot(h, w3_ref[...], preferred_element_type=jnp.float32)
    o_ref[...] = (out + b3_ref[...]).astype(o_ref.dtype)


def prepare_params(params):
    """One-time lane padding of weights/biases (hoisted out of the hot path).

    Hidden dims F1, F2 are zero-padded to multiples of 128 lanes; the padded
    rows/cols and zero biases keep the padded lanes exactly zero through the
    ReLU chain.  The output dim A is left UN-padded so the kernel only writes
    the true action columns to HBM.
    """
    S, F1 = params["w1"].shape
    F2 = params["w2"].shape[1]
    A = params["w3"].shape[1]
    F1P = _round_up(F1, LANE)
    F2P = _round_up(F2, LANE)
    return {
        "w1": _pad2d(params["w1"], S, F1P),
        "b1": _pad2d(params["b1"], 1, F1P),
        "w2": _pad2d(params["w2"], F1P, F2P),
        "b2": _pad2d(params["b2"], 1, F2P),
        "w3": _pad2d(params["w3"], F2P, A),
        "b3": params["b3"],
    }


def qnetwork_forward(state, prepared, *, batch_tile=2048):
    """Fused 3-layer MLP forward.

    state:    [B, state_size] float32
    prepared: output of prepare_params (lane-padded weights/biases)
    returns   [B, action_size] float32
    """
    B, S = state.shape
    F1P = prepared["w1"].shape[1]
    F2P = prepared["w2"].shape[1]
    A = prepared["w3"].shape[1]

    # Batch tiling: TB is always a multiple of 8 sublanes; rows are spread
    # evenly across >=2 grid steps when there are >=16 rows (so both v7x
    # TensorCores participate), with the per-step tile capped at batch_tile.
    B8 = _round_up(B, SUBLANE)
    max_tb = max(SUBLANE, _round_up(batch_tile, SUBLANE))
    steps = max(1, _cdiv(B8, max_tb))
    if B8 >= 2 * SUBLANE:
        steps = max(steps, 2)
    TB = _round_up(_cdiv(B8, steps), SUBLANE)
    BP = TB * steps

    x = state if BP == B else jnp.pad(state, ((0, BP - B), (0, 0)))

    # Weights/biases never change block index -> keep them single-buffered and
    # VMEM-resident across all grid steps.
    resident = pl.Buffered(1)

    flops = 2 * BP * (S * F1P + F1P * F2P + F2P * A)
    bytes_accessed = 4 * (
        BP * S + BP * A                    # activations in / out
        + S * F1P + F1P * F2P + F2P * A    # weights
        + F1P + F2P + A                    # biases
    )

    out = pl.pallas_call(
        qnet_kernel,
        out_shape=jax.ShapeDtypeStruct((BP, A), jnp.float32),
        grid=(steps,),
        in_specs=[
            pl.BlockSpec((TB, S), lambda i: (i, 0)),          # x: tiled over batch
            pl.BlockSpec((S, F1P), lambda i: (0, 0), pipeline_mode=resident),
            pl.BlockSpec((1, F1P), lambda i: (0, 0), pipeline_mode=resident),
            pl.BlockSpec((F1P, F2P), lambda i: (0, 0), pipeline_mode=resident),
            pl.BlockSpec((1, F2P), lambda i: (0, 0), pipeline_mode=resident),
            pl.BlockSpec((F2P, A), lambda i: (0, 0), pipeline_mode=resident),
            pl.BlockSpec((1, A), lambda i: (0, 0), pipeline_mode=resident),
        ],
        out_specs=pl.BlockSpec((TB, A), lambda i: (i, 0)),    # narrow (A-lane) output
        compiler_params=pltpu.CompilerParams(
            dimension_semantics=("parallel",),                # v7x: shard batch over 2 TCs
        ),
        cost_estimate=pl.CostEstimate(
            flops=flops, transcendentals=0, bytes_accessed=bytes_accessed),
    )(x, prepared["w1"], prepared["b1"], prepared["w2"], prepared["b2"],
      prepared["w3"], prepared["b3"])

    return out if BP == B else out[:B]


def init_params(key, state_size, action_size, fc1_units=64, fc2_units=64):
    """Deterministic init mimicking PyTorch nn.Linear default:
    U(-1/sqrt(fan_in), 1/sqrt(fan_in)) for both weight and bias."""
    keys = jax.random.split(key, 6)

    def linear(kw, kb, fan_in, fan_out):
        bound = 1.0 / jnp.sqrt(jnp.float32(fan_in))
        w = jax.random.uniform(kw, (fan_in, fan_out), jnp.float32, -bound, bound)
        b = jax.random.uniform(kb, (1, fan_out), jnp.float32, -bound, bound)
        return w, b

    w1, b1 = linear(keys[0], keys[1], state_size, fc1_units)
    w2, b2 = linear(keys[2], keys[3], fc1_units, fc2_units)
    w3, b3 = linear(keys[4], keys[5], fc2_units, action_size)
    return {"w1": w1, "b1": b1, "w2": w2, "b2": b2, "w3": w3, "b3": b3}


def reference_forward(state, params):
    h = jnp.maximum(state @ params["w1"] + params["b1"], 0.0)
    h = jnp.maximum(h @ params["w2"] + params["b2"], 0.0)
    return h @ params["w3"] + params["b3"]


if __name__ == "__main__":
    state_size = 8
    action_size = 4

    key = jax.random.PRNGKey(0)
    k_params, k_state = jax.random.split(key)
    params = init_params(k_params, state_size, action_size)
    prepared = prepare_params(params)   # one-time weight padding (off hot path)

    # Small single-tile case (toy shapes from the spec).
    state_small = jax.random.normal(k_state, (8, state_size), jnp.float32)
    out_small = jax.block_until_ready(qnetwork_forward(state_small, prepared))
    ref_small = reference_forward(state_small, params)
    assert out_small.shape == (8, action_size), out_small.shape
    assert jnp.allclose(out_small, ref_small, atol=1e-5, rtol=1e-5), "small-batch mismatch"

    # Multi-tile case: exercises the multi-step batch grid, resident weights,
    # the narrow-output path and padded-batch slicing.
    state_big = jax.random.normal(jax.random.PRNGKey(1), (300, state_size), jnp.float32)
    out_big = jax.block_until_ready(qnetwork_forward(state_big, prepared, batch_tile=128))
    ref_big = reference_forward(state_big, params)
    assert out_big.shape == (300, action_size), out_big.shape
    assert jnp.allclose(out_big, ref_big, atol=1e-4, rtol=1e-5), "big-batch mismatch"

    print("KERNEL_OK")
</pallas_src>

<mosaic_0001>
module attributes {stable_mosaic.version = 11 : i64} {
  func.func @qnet_kernel(%arg0: i32, %arg1: memref<8x8xf32, #tpu.memory_space<vmem>>, %arg2: memref<8x128xf32, #tpu.memory_space<vmem>>, %arg3: memref<1x128xf32, #tpu.memory_space<vmem>>, %arg4: memref<128x128xf32, #tpu.memory_space<vmem>>, %arg5: memref<1x128xf32, #tpu.memory_space<vmem>>, %arg6: memref<128x4xf32, #tpu.memory_space<vmem>>, %arg7: memref<1x4xf32, #tpu.memory_space<vmem>>, %arg8: memref<8x4xf32, #tpu.memory_space<vmem>>) attributes {dimension_semantics = [#tpu.dimension_semantics<parallel>], iteration_bounds = array<i64: 1>, scalar_prefetch = 0 : i64, scratch_operands = 0 : i64, tpu.core_type = #tpu.core_type<tc>, window_params = [{transform_indices = @transform_0, window_bounds = array<i64: 8, 8>}, {pipeline_mode = #tpu.pipeline_mode<synchronous>, transform_indices = @transform_1, window_bounds = array<i64: 8, 128>}, {pipeline_mode = #tpu.pipeline_mode<synchronous>, transform_indices = @transform_2, window_bounds = array<i64: 1, 128>}, {pipeline_mode = #tpu.pipeline_mode<synchronous>, transform_indices = @transform_3, window_bounds = array<i64: 128, 128>}, {pipeline_mode = #tpu.pipeline_mode<synchronous>, transform_indices = @transform_4, window_bounds = array<i64: 1, 128>}, {pipeline_mode = #tpu.pipeline_mode<synchronous>, transform_indices = @transform_5, window_bounds = array<i64: 128, 4>}, {pipeline_mode = #tpu.pipeline_mode<synchronous>, transform_indices = @transform_6, window_bounds = array<i64: 1, 4>}, {transform_indices = @transform_7, window_bounds = array<i64: 8, 4>}]} {
    %c0 = arith.constant 0 : index
    %c0_0 = arith.constant 0 : index
    %0 = vector.load %arg1[%c0, %c0_0] : memref<8x8xf32, #tpu.memory_space<vmem>>, vector<8x8xf32>
    %c0_1 = arith.constant 0 : index
    %c0_2 = arith.constant 0 : index
    %1 = vector.load %arg2[%c0_1, %c0_2] : memref<8x128xf32, #tpu.memory_space<vmem>>, vector<8x128xf32>
    %cst = arith.constant dense<0.000000e+00> : vector<8x128xf32>
    %2 = tpu.matmul %0, %1, %cst {dimension_numbers = #tpu.dot_dimension_numbers<[1], [0], [0], [1], [0, 0, 1, 1], [], []>} : vector<8x8xf32>, vector<8x128xf32>, vector<8x128xf32> -> vector<8x128xf32>
    %c0_3 = arith.constant 0 : index
    %c0_4 = arith.constant 0 : index
    %3 = vector.load %arg3[%c0_3, %c0_4] : memref<1x128xf32, #tpu.memory_space<vmem>>, vector<1x128xf32>
    %4 = vector.broadcast %3 : vector<1x128xf32> to vector<8x128xf32>
    %5 = arith.addf %2, %4 : vector<8x128xf32>
    %cst_5 = arith.constant 0.000000e+00 : f32
    %6 = vector.broadcast %cst_5 : f32 to vector<8x128xf32>
    %7 = arith.maximumf %5, %6 : vector<8x128xf32>
    %c0_6 = arith.constant 0 : index
    %c0_7 = arith.constant 0 : index
    %8 = vector.load %arg4[%c0_6, %c0_7] : memref<128x128xf32, #tpu.memory_space<vmem>>, vector<128x128xf32>
    %cst_8 = arith.constant dense<0.000000e+00> : vector<8x128xf32>
    %9 = tpu.matmul %7, %8, %cst_8 {dimension_numbers = #tpu.dot_dimension_numbers<[1], [0], [0], [1], [0, 0, 1, 1], [], []>} : vector<8x128xf32>, vector<128x128xf32>, vector<8x128xf32> -> vector<8x128xf32>
    %c0_9 = arith.constant 0 : index
    %c0_10 = arith.constant 0 : index
    %10 = vector.load %arg5[%c0_9, %c0_10] : memref<1x128xf32, #tpu.memory_space<vmem>>, vector<1x128xf32>
    %11 = vector.broadcast %10 : vector<1x128xf32> to vector<8x128xf32>
    %12 = arith.addf %9, %11 : vector<8x128xf32>
    %cst_11 = arith.constant 0.000000e+00 : f32
    %13 = vector.broadcast %cst_11 : f32 to vector<8x128xf32>
    %14 = arith.maximumf %12, %13 : vector<8x128xf32>
    %c0_12 = arith.constant 0 : index
    %c0_13 = arith.constant 0 : index
    %15 = vector.load %arg6[%c0_12, %c0_13] : memref<128x4xf32, #tpu.memory_space<vmem>>, vector<128x4xf32>
    %cst_14 = arith.constant dense<0.000000e+00> : vector<8x4xf32>
    %16 = tpu.matmul %14, %15, %cst_14 {dimension_numbers = #tpu.dot_dimension_numbers<[1], [0], [0], [1], [0, 0, 1, 1], [], []>} : vector<8x128xf32>, vector<128x4xf32>, vector<8x4xf32> -> vector<8x4xf32>
    %c0_15 = arith.constant 0 : index
    %c0_16 = arith.constant 0 : index
    %17 = vector.load %arg7[%c0_15, %c0_16] : memref<1x4xf32, #tpu.memory_space<vmem>>, vector<1x4xf32>
    %18 = vector.broadcast %17 : vector<1x4xf32> to vector<8x4xf32>
    %19 = arith.addf %16, %18 : vector<8x4xf32>
    %c0_17 = arith.constant 0 : index
    %c0_18 = arith.constant 0 : index
    %20 = vector.load %arg8[%c0_17, %c0_18] : memref<8x4xf32, #tpu.memory_space<vmem>>, vector<8x4xf32>
    tpu.vector_store %arg8[%c0_17, %c0_18], %19 {strides = array<i32>} : memref<8x4xf32, #tpu.memory_space<vmem>>, vector<8x4xf32>,
    return
  }
  func.func @transform_0(%arg0: i32) -> (i32, i32) {
    %c0_i32 = arith.constant 0 : i32
    %c0_i32_0 = arith.constant 0 : i32
    return %arg0, %c0_i32 : i32, i32
  }
  func.func @transform_1(%arg0: i32) -> (i32, i32) {
    %c0_i32 = arith.constant 0 : i32
    %c0_i32_0 = arith.constant 0 : i32
    %c0_i32_1 = arith.constant 0 : i32
    return %c0_i32, %c0_i32_0 : i32, i32
  }
  func.func @transform_2(%arg0: i32) -> (i32, i32) {
    %c0_i32 = arith.constant 0 : i32
    %c0_i32_0 = arith.constant 0 : i32
    %c0_i32_1 = arith.constant 0 : i32
    return %c0_i32, %c0_i32_0 : i32, i32
  }
  func.func @transform_3(%arg0: i32) -> (i32, i32) {
    %c0_i32 = arith.constant 0 : i32
    %c0_i32_0 = arith.constant 0 : i32
    %c0_i32_1 = arith.constant 0 : i32
    return %c0_i32, %c0_i32_0 : i32, i32
  }
  func.func @transform_4(%arg0: i32) -> (i32, i32) {
    %c0_i32 = arith.constant 0 : i32
    %c0_i32_0 = arith.constant 0 : i32
    %c0_i32_1 = arith.constant 0 : i32
    return %c0_i32, %c0_i32_0 : i32, i32
  }
  func.func @transform_5(%arg0: i32) -> (i32, i32) {
    %c0_i32 = arith.constant 0 : i32
    %c0_i32_0 = arith.constant 0 : i32
    %c0_i32_1 = arith.constant 0 : i32
    return %c0_i32, %c0_i32_0 : i32, i32
  }
  func.func @transform_6(%arg0: i32) -> (i32, i32) {
    %c0_i32 = arith.constant 0 : i32
    %c0_i32_0 = arith.constant 0 : i32
    %c0_i32_1 = arith.constant 0 : i32
    return %c0_i32, %c0_i32_0 : i32, i32
  }
  func.func @transform_7(%arg0: i32) -> (i32, i32) {
    %c0_i32 = arith.constant 0 : i32
    %c0_i32_0 = arith.constant 0 : i32
    return %arg0, %c0_i32 : i32, i32
  }
}

</mosaic_0001>

<bundles_post_ra>
// kernel: tpu_custom_call.1
= control target key start
LH: loop header
LB: loop body
LE: loop exit
PB: predicated region body
PF: predicated region fallthrough
CT: control target
= control target key end

     0   :  { %12 = vsyncpa [#allocation3], 0  ;;  %s689_s0 = inlined_call_operand.vmem [shape: f32[8,8], index: 0, kind: input, shape index: {}]   ;;  %s690_s1 = inlined_call_operand.hbm [shape: f32[8,128], index: 1, kind: input, shape index: {}]   ;;  %s691_s2 = inlined_call_operand.vmem [shape: f32[1,128], index: 2, kind: input, shape index: {}]   ;;  %s692_s3 = inlined_call_operand.vmem [shape: f32[128,128], index: 3, kind: input, shape index: {}]   ;;  %s693_s4 = inlined_call_operand.hbm [shape: f32[1,128], index: 4, kind: input, shape index: {}]   ;;  %s694_s5 = inlined_call_operand.vmem [shape: f32[128,4], index: 5, kind: input, shape index: {}]   ;;  %s695_s6 = inlined_call_operand.vmem [shape: f32[1,4], index: 6, kind: input, shape index: {}]   ;;  %s696_s7 = inlined_call_operand.vmem [shape: f32[8,4], index: 7, kind: output, shape index: {}]  }
   0x1   :  { %13 = vsyncpa [#allocation5], 0  ;;  %s492_s24 = smov [#allocation2]   ;;  %s493_s26 = smov [#allocation4]  }
   0x2   :  { %s22_s25 = sshll.u32 %s492_s24, 4  ;;  %s36_s27 = sshll.u32 %s493_s26, 4  ;;  %s23_s25 = int_to_ptr.vmem [resolvable:$true] %s22_s25  ;;  %s37_s27 = int_to_ptr.vmem [resolvable:$true] %s36_s27 }
   0x3   :  { %s456_s28 = scalar_lea.vmem %s23_s25, 128  ;;  %p461_p1 = scmp.lt.s32.totalorder %s23_s25, %s23_s25 }
   0x4   :  { %p457_p0 = scmp.ne.s32.totalorder %s23_s25, %s456_s28  ;;  %p462_p2 = scmp.lt.s32.totalorder %s456_s28, %s456_s28 }
   0x6   :  { %p463_p3 = por %p462_p2, %p461_p1 }
   0x8   :  { %p464_p4 = pnand %p463_p3, %p457_p0 }
   0xa   :  { %467 = shalt.err (!%p464_p4)
}
   0xb   :  { %25 = dma.hbm_to_vmem [thread:$0]  %s690_s1, 128, %s23_s25, [#allocation3]  }
   0xc   :  { %s476_s8 = scalar_lea.vmem %s37_s27, 16  ;;  %s480_s9 = scalar_lea.vmem %s37_s27, 32 }
   0xd   :  { %p477_p5 = scmp.ne.s32.totalorder %s37_s27, %s476_s8  ;;  %p481_p6 = scmp.lt.s32.totalorder %s37_s27, %s37_s27 }
   0xe   :  { %p482_p7 = scmp.lt.s32.totalorder %s480_s9, %s476_s8 }
  0x10   :  { %p483_p8 = por %p482_p7, %p481_p6 }
  0x12   :  { %p484_p9 = pnand %p483_p8, %p477_p5 }
  0x14   :  { %487 = shalt.err (!%p484_p9)
}
  0x15   :  { %39 = dma.hbm_to_vmem [thread:$0]  %s693_s4, 16, %s37_s27, [#allocation5]  }
  0x16   :  { %488 = dma.done.wait [#allocation3], 128  }
  0x17   :  { %489 = vsyncadd [#allocation3], 4294967168 }
  0x18   :  { %490 = dma.done.wait [#allocation5], 16  }
  0x19   :  { %491 = vsyncadd [#allocation5], 4294967280  ;;  %v494_v0 = vmov 0.0   ;;  %vm495_vm0 = vmmov 0   ;;  %vm59_vm1 = vcmask 64512   ;;  %v51_v1 = vld [vmem:[#allocation2] sm:$0xff] }
  0x1a   :  { %369 = vmatprep.subr.mxu0 %v494_v0  ;;  %371 = vmatprep.mubr.msk.f32.mxu0 %vm495_vm0, %v494_v0  ;;  %v50_v2 = vld [vmem:[%s689_s0] sm:$0xff]  ;;  %v149_v3 = vld [vmem:[%s692_s3 + $0x78] sm:$0xff]  ;;  %v148_v4 = vld [vmem:[%s692_s3 + $0x70] sm:$0xff]  ;;  %vm321_vm2 = vcmask 31744  }
  0x1b   :  { %374 = vmatprep.subr.mxu1 %v494_v0  ;;  %406 = vmatprep.mubr.msk.f32.mxu1 %vm495_vm0, %v494_v0  ;;  %v147_v5 = vld [vmem:[%s692_s3 + $0x68] sm:$0xff]  ;;  %v146_v6 = vld [vmem:[%s692_s3 + $0x60] sm:$0xff]  ;;  %v145_v7 = vld [vmem:[%s692_s3 + $0x58] sm:$0xff] }
  0x1c   :  { %370 = vmatpush3.msra.mxu0 %v51_v1  ;;  %375 = vmatpush3.msra.mxu1 %v149_v3  ;;  %v144_v8 = vld [vmem:[%s692_s3 + $0x50] sm:$0xff]  ;;  %v143_v9 = vld [vmem:[%s692_s3 + $0x48] sm:$0xff]  ;;  %v142_v10 = vld [vmem:[%s692_s3 + $0x40] sm:$0xff] }
  0x1d   :  { %372 = vmatmul.mubr.msk.f32.vlgmr.msra.gmra.mxu0 %vm59_vm1, %v50_v2  ;;  %376 = vmatprep.subr.mxu1 %v494_v0  ;;  %v141_v11 = vld [vmem:[%s692_s3 + $0x38] sm:$0xff]  ;;  %v140_v12 = vld [vmem:[%s692_s3 + $0x30] sm:$0xff]  ;;  %v139_v13 = vld [vmem:[%s692_s3 + $0x28] sm:$0xff] }
  0x1e   :  { %377 = vmatpush3.msra.mxu1 %v148_v4  ;;  %409 = vmatprep.subr.mxu0 %v494_v0  ;;  %v138_v14 = vld [vmem:[%s692_s3 + $0x20] sm:$0xff]  ;;  %v137_v15 = vld [vmem:[%s692_s3 + $0x18] sm:$0xff]  ;;  %v136_v16 = vld [vmem:[%s692_s3 + $0x10] sm:$0xff] }
  0x1f   :  { %378 = vmatprep.subr.mxu1 %v494_v0  ;;  %441 = vmatprep.mubr.msk.f32.mxu0 %vm495_vm0, %v494_v0  ;;  %v135_v17 = vld [vmem:[%s692_s3 + $0x8] sm:$0xff]  ;;  %v134_v18 = vld [vmem:[%s692_s3] sm:$0xff]  ;;  %v243_v19 = vld [vmem:[%s694_s5 + $0x78] sm:$0xff] }
  0x20   :  { %379 = vmatpush3.msra.mxu1 %v147_v5  ;;  %v242_v20 = vld [vmem:[%s694_s5 + $0x70] sm:$0xff]  ;;  %410 = vmatpush3.msra.mxu0 %v243_v19  ;;  %v241_v21 = vld [vmem:[%s694_s5 + $0x68] sm:$0xff]  ;;  %v240_v22 = vld [vmem:[%s694_s5 + $0x60] sm:$0xff] }
  0x21   :  { %380 = vmatprep.subr.mxu1 %v494_v0  ;;  %411 = vmatprep.subr.mxu0 %v494_v0  ;;  %v239_v23 = vld [vmem:[%s694_s5 + $0x58] sm:$0xff]  ;;  %v238_v24 = vld [vmem:[%s694_s5 + $0x50] sm:$0xff]  ;;  %v237_v25 = vld [vmem:[%s694_s5 + $0x48] sm:$0xff] }
  0x22   :  { %381 = vmatpush3.msra.mxu1 %v146_v6  ;;  %412 = vmatpush3.msra.mxu0 %v242_v20  ;;  %v236_v26 = vld [vmem:[%s694_s5 + $0x40] sm:$0xff]  ;;  %v235_v27 = vld [vmem:[%s694_s5 + $0x38] sm:$0xff]  ;;  %v234_v28 = vld [vmem:[%s694_s5 + $0x30] sm:$0xff] }
  0x23   :  { %382 = vmatprep.subr.mxu1 %v494_v0  ;;  %413 = vmatprep.subr.mxu0 %v494_v0  ;;  %v233_v29 = vld [vmem:[%s694_s5 + $0x28] sm:$0xff]  ;;  %v232_v30 = vld [vmem:[%s694_s5 + $0x20] sm:$0xff]  ;;  %v231_v31 = vld [vmem:[%s694_s5 + $0x18] sm:$0xff] }
  0x24   :  { %383 = vmatpush3.msra.mxu1 %v145_v7  ;;  %414 = vmatpush3.msra.mxu0 %v241_v21  ;;  %v329_v32 = vld [vmem:[%s691_s2] ss:$0 sm:$0xff]  ;;  %v230_v37 = vld [vmem:[%s694_s5 + $0x10] sm:$0xff]  ;;  %v229_v38 = vld [vmem:[%s694_s5 + $0x8] sm:$0xff] }
  0x25   :  { %384 = vmatprep.subr.mxu1 %v494_v0  ;;  %415 = vmatprep.subr.mxu0 %v494_v0  ;;  %v228_v39 = vld [vmem:[%s694_s5] sm:$0xff]  ;;  %v331_v40 = vld [vmem:[#allocation4] ss:$0 sm:$0xff] }
  0x26   :  { %385 = vmatpush3.msra.mxu1 %v144_v8  ;;  %416 = vmatpush3.msra.mxu0 %v240_v22  ;;  %v332_v45 = vld [vmem:[%s695_s6] ss:$0 sm:$0xff] }
  0x27   :  { %386 = vmatprep.subr.mxu1 %v494_v0  ;;  %417 = vmatprep.subr.mxu0 %v494_v0 }
  0x28   :  { %387 = vmatpush3.msra.mxu1 %v143_v9  ;;  %418 = vmatpush3.msra.mxu0 %v239_v23 }
  0x29   :  { %388 = vmatprep.subr.mxu1 %v494_v0  ;;  %419 = vmatprep.subr.mxu0 %v494_v0 }
  0x2a   :  { %389 = vmatpush3.msra.mxu1 %v142_v10  ;;  %420 = vmatpush3.msra.mxu0 %v238_v24 }
  0x2b   :  { %390 = vmatprep.subr.mxu1 %v494_v0  ;;  %421 = vmatprep.subr.mxu0 %v494_v0 }
  0x2c   :  { %391 = vmatpush3.msra.mxu1 %v141_v11  ;;  %422 = vmatpush3.msra.mxu0 %v237_v25 }
  0x2d   :  { %392 = vmatprep.subr.mxu1 %v494_v0  ;;  %423 = vmatprep.subr.mxu0 %v494_v0 }
  0x2e   :  { %393 = vmatpush3.msra.mxu1 %v140_v12  ;;  %424 = vmatpush3.msra.mxu0 %v236_v26 }
  0x2f   :  { %394 = vmatprep.subr.mxu1 %v494_v0  ;;  %425 = vmatprep.subr.mxu0 %v494_v0 }
  0x30   :  { %395 = vmatpush3.msra.mxu1 %v139_v13  ;;  %426 = vmatpush3.msra.mxu0 %v235_v27 }
  0x31   :  { %396 = vmatprep.subr.mxu1 %v494_v0  ;;  %427 = vmatprep.subr.mxu0 %v494_v0 }
  0x32   :  { %397 = vmatpush3.msra.mxu1 %v138_v14  ;;  %428 = vmatpush3.msra.mxu0 %v234_v28 }
  0x33   :  { %398 = vmatprep.subr.mxu1 %v494_v0  ;;  %429 = vmatprep.subr.mxu0 %v494_v0 }
  0x34   :  { %399 = vmatpush3.msra.mxu1 %v137_v15  ;;  %430 = vmatpush3.msra.mxu0 %v233_v29 }
  0x35   :  { %400 = vmatprep.subr.mxu1 %v494_v0  ;;  %431 = vmatprep.subr.mxu0 %v494_v0 }
  0x36   :  { %401 = vmatpush3.msra.mxu1 %v136_v16  ;;  %432 = vmatpush3.msra.mxu0 %v232_v30 }
  0x37   :  { %402 = vmatprep.subr.mxu1 %v494_v0  ;;  %433 = vmatprep.subr.mxu0 %v494_v0 }
  0x38   :  { %403 = vmatpush3.msra.mxu1 %v135_v17  ;;  %434 = vmatpush3.msra.mxu0 %v231_v31 }
  0x39   :  { %404 = vmatprep.subr.mxu1 %v494_v0  ;;  %435 = vmatprep.subr.mxu0 %v494_v0 }
  0x3a   :  { %405 = vmatpush3.msra.mxu1 %v134_v18  ;;  %436 = vmatpush3.msra.mxu0 %v230_v37 }
  0x3b   :  { %437 = vmatprep.subr.mxu0 %v494_v0 }
  0x3c   :  { %438 = vmatpush3.msra.mxu0 %v229_v38 }
  0x3d   :  { %439 = vmatprep.subr.mxu0 %v494_v0 }
  0x3e   :  { %440 = vmatpush3.msra.mxu0 %v228_v39 }
  0xdd   :  { %v129_v33 = vpop.f32.mrf.mxu0 }
  0xde   :  { %v130_v34 = vadd.f32 %v329_v32, %v129_v33 }
  0xdf   :  { %v373_v35 = vpop.f32.mrf.mxu0 }
  0xe0   :  { %v133_v36 = vmax.f32 %v130_v34, 0.0 }
  0xe2   :  { %407 = vmatmul.mubr.f32.vlgmr.msra.gmra.mxu1 %v133_v36 }
 0x1a2   :  { %v223_v41 = vpop.f32.mrf.mxu1 }
 0x1a3   :  { %v224_v42 = vadd.f32 %v331_v40, %v223_v41 }
 0x1a4   :  { %v408_v43 = vpop.f32.mrf.mxu1 }
 0x1a5   :  { %v227_v44 = vmax.f32 %v224_v42, 0.0 }
 0x1a7   :  { %442 = vmatmul.mubr.f32.vlgmr.msra.gmra.mxu0 %v227_v44 }
 0x267   :  { %v317_v46 = vpop.f32.mrf.mxu0 }
 0x268   :  { %v318_v47 = vadd.f32 %v332_v45, %v317_v46 }
 0x269   :  { %v443_v48 = vpop.f32.mrf.mxu0 }
 0x26a   :  { %322 = vst.msk [vmem:[%s696_s7] sm:$0xff] %vm321_vm2, %v318_v47 }
 0x26b   :  { %327 = vsyncpa [#allocation3], 1 }
 0x26c   :  { %328 = vsyncpa [#allocation5], 1 }

</bundles_post_ra>
